<compile_context>
chip_gen: v5e
topology: v5e:2x2
jax: 0.10.0
libtpu: 0.0.40
codegen_flags: <defaults>
</compile_context>

<pallas_src>
import math

import jax
import jax.numpy as jnp
from jax.experimental import pallas as pl
from jax.experimental.pallas import tpu as pltpu


# ----------------------------------------------------------------------------
# Pallas kernel: one (1, TS, E) output tile per grid step.
# ----------------------------------------------------------------------------
def _embed_ln_kernel(ids_ref, table_ref, enc_ref, gb_ref, out_ref):
    # ids_ref:   (1, TS, 1) int32  token ids for this (batch, seq-tile)
    # table_ref: (Vp, E)    f32    full (vocab-padded) embedding table, resident
    # enc_ref:   (TS, E)    f32    positional encoding rows for this seq tile
    # gb_ref:    (2, E)     f32    stacked LayerNorm gamma/beta, resident
    # out_ref:   (1, TS, E) f32
    ts = out_ref.shape[1]
    e = out_ref.shape[2]
    vp = table_ref.shape[0]

    # ---- embedding gather as a one-hot MXU matmul (table stays on-chip) ----
    ids = ids_ref[0]                                              # (TS, 1)
    col = jax.lax.broadcasted_iota(jnp.int32, (ts, vp), 1)        # (TS, Vp)
    one_hot = (ids == col).astype(jnp.float32)                    # exact 0/1
    emb = jnp.dot(one_hot, table_ref[...],
                  preferred_element_type=jnp.float32,
                  precision=jax.lax.Precision.HIGHEST)            # (TS, E)

    # ---- positional encoding: this tile was DMA'd as a (TS, E) block --------
    x = emb + enc_ref[...]                                        # (TS, E)

    # ---- LayerNorm, single-pass stats (eps = 1e-5) --------------------------
    inv_e = 1.0 / e
    s1 = jnp.sum(x, axis=-1, keepdims=True)
    s2 = jnp.sum(x * x, axis=-1, keepdims=True)
    mean = s1 * inv_e
    var = s2 * inv_e - mean * mean
    inv = jax.lax.rsqrt(var + 1e-5)                               # EUP
    gamma = gb_ref[0:1, :]
    beta = gb_ref[1:2, :]
    out_ref[0] = ((x - mean) * inv * gamma + beta).astype(out_ref.dtype)


def _choose_seq_tile(S):
    # Largest multiple-of-8 tile <= 256 that divides S; fall back to S itself
    # (full-extent block, always legal).
    if S <= 256:
        return S
    for ts in range(256, 7, -8):
        if S % ts == 0:
            return ts
    return S


def input_embedding_forward(ids, emb_table, encoding, gamma, beta):
    """ids: (B, S) int32; emb_table: (V, E); encoding: (S, E); gamma/beta: (E,)."""
    B, S = ids.shape
    V, E = emb_table.shape
    # The PyTorch forward's `X + encoding` broadcast requires S == max_seq_length.
    assert encoding.shape == (S, E), "seq_len must equal max_seq_length"

    TS = _choose_seq_tile(S)
    grid = (B, S // TS)

    # Pad the vocab axis to a multiple of 128 so the one-hot contraction is
    # lane/sublane aligned; padded rows are never selected (ids < V), so the
    # extra zero columns contribute nothing.
    Vp = ((V + 127) // 128) * 128
    table = emb_table.astype(jnp.float32)
    if Vp != V:
        table = jnp.pad(table, ((0, Vp - V), (0, 0)))

    ids3 = ids.astype(jnp.int32).reshape(B, S, 1)
    enc = encoding.astype(jnp.float32)
    gb = jnp.stack([gamma.astype(jnp.float32), beta.astype(jnp.float32)], 0)  # (2, E)

    out = pl.pallas_call(
        _embed_ln_kernel,
        out_shape=jax.ShapeDtypeStruct((B, S, E), jnp.float32),
        grid=grid,
        in_specs=[
            # token ids for this tile (tiny DMA, pipelined)
            pl.BlockSpec((1, TS, 1), lambda b, j: (b, j, 0)),
            # VMEM-resident table / affine params (constant block index)
            pl.BlockSpec((Vp, E), lambda b, j: (0, 0)),
            # per-tile positional-encoding rows (pipelined, no in-kernel slice)
            pl.BlockSpec((TS, E), lambda b, j: (j, 0)),
            pl.BlockSpec((2, E), lambda b, j: (0, 0)),
        ],
        out_specs=pl.BlockSpec((1, TS, E), lambda b, j: (b, j, 0)),
        compiler_params=pltpu.CompilerParams(
            dimension_semantics=("parallel", "parallel")),
    )(ids3, table, enc, gb)
    return out


# ----------------------------------------------------------------------------
# Parameter / buffer construction (mirrors InputEmbedding.__init__)
# ----------------------------------------------------------------------------
def make_sinusoidal_encoding(max_seq_length, embed_dims):
    # PyTorch reference computes position / inv_denom / sin / cos in float16,
    # then stores into a float32 buffer — mimic that precision path.
    position = jnp.arange(0, max_seq_length, dtype=jnp.float16)[:, None]
    inv_denom = jnp.exp(
        jnp.arange(0, embed_dims, 2, dtype=jnp.float16)
        * jnp.float16(-math.log(10000.0) / embed_dims))
    ang = position * inv_denom                       # (S_max, E/2) float16
    enc = jnp.zeros((max_seq_length, embed_dims), dtype=jnp.float32)
    enc = enc.at[:, 0::2].set(jnp.sin(ang).astype(jnp.float32))
    enc = enc.at[:, 1::2].set(jnp.cos(ang).astype(jnp.float32))
    return enc


def init_params(key, vocab_size, embed_dims):
    # nn.Embedding default init: N(0, 1); nn.LayerNorm: weight=1, bias=0.
    emb_table = jax.random.normal(key, (vocab_size, embed_dims), dtype=jnp.float32)
    gamma = jnp.ones((embed_dims,), dtype=jnp.float32)
    beta = jnp.zeros((embed_dims,), dtype=jnp.float32)
    return emb_table, gamma, beta


# ----------------------------------------------------------------------------
if __name__ == "__main__":
    VOCAB = 50
    EMBED = 128
    MAX_SEQ = 8
    BATCH = 2

    key = jax.random.PRNGKey(0)
    k_emb, k_ids = jax.random.split(key)

    emb_table, gamma, beta = init_params(k_emb, VOCAB, EMBED)
    encoding = make_sinusoidal_encoding(MAX_SEQ, EMBED)
    ids = jax.random.randint(k_ids, (BATCH, MAX_SEQ), 0, VOCAB, dtype=jnp.int32)

    out = input_embedding_forward(ids, emb_table, encoding, gamma, beta)
    out = jax.block_until_ready(out)

    # Pure-JAX reference for a sanity check.
    x_ref = emb_table[ids] + encoding[None, :, :]
    mean = jnp.mean(x_ref, axis=-1, keepdims=True)
    var = jnp.mean((x_ref - mean) ** 2, axis=-1, keepdims=True)
    ref = (x_ref - mean) / jnp.sqrt(var + 1e-5) * gamma + beta

    assert out.shape == (BATCH, MAX_SEQ, EMBED)
    assert out.dtype == jnp.float32
    assert jnp.allclose(out, ref, atol=1e-3, rtol=1e-3)

    print("KERNEL_OK")
</pallas_src>

<mosaic_0001>
module attributes {stable_mosaic.version = 11 : i64} {
  func.func @_embed_ln_kernel(%arg0: i32, %arg1: i32, %arg2: memref<1x8x1xi32, #tpu.memory_space<vmem>>, %arg3: memref<128x128xf32, #tpu.memory_space<vmem>>, %arg4: memref<8x128xf32, #tpu.memory_space<vmem>>, %arg5: memref<2x128xf32, #tpu.memory_space<vmem>>, %arg6: memref<1x8x128xf32, #tpu.memory_space<vmem>>) attributes {dimension_semantics = [#tpu.dimension_semantics<parallel>, #tpu.dimension_semantics<parallel>], iteration_bounds = array<i64: 2, 1>, scalar_prefetch = 0 : i64, scratch_operands = 0 : i64, tpu.core_type = #tpu.core_type<tc>, window_params = [{transform_indices = @transform_0, window_bounds = array<i64: 1, 8, 1>}, {pipeline_mode = #tpu.pipeline_mode<synchronous>, transform_indices = @transform_1, window_bounds = array<i64: 128, 128>}, {transform_indices = @transform_2, window_bounds = array<i64: 8, 128>}, {pipeline_mode = #tpu.pipeline_mode<synchronous>, transform_indices = @transform_3, window_bounds = array<i64: 2, 128>}, {transform_indices = @transform_4, window_bounds = array<i64: 1, 8, 128>}]} {
    %c0 = arith.constant 0 : index
    %c0_0 = arith.constant 0 : index
    %c0_1 = arith.constant 0 : index
    %0 = vector.load %arg2[%c0, %c0_0, %c0_1] : memref<1x8x1xi32, #tpu.memory_space<vmem>>, vector<1x8x1xi32>
    %1 = vector.shape_cast %0 : vector<1x8x1xi32> to vector<8x1xi32>
    %2 = tpu.iota {dimensions = array<i32: 1>} : vector<8x128xi32>
    %3 = vector.broadcast %1 : vector<8x1xi32> to vector<8x128xi32>
    %4 = arith.cmpi eq, %3, %2 : vector<8x128xi32>
    %5 = arith.extui %4 : vector<8x128xi1> to vector<8x128xi32>
    %6 = arith.sitofp %5 : vector<8x128xi32> to vector<8x128xf32>
    %c0_2 = arith.constant 0 : index
    %c0_3 = arith.constant 0 : index
    %7 = vector.load %arg3[%c0_2, %c0_3] : memref<128x128xf32, #tpu.memory_space<vmem>>, vector<128x128xf32>
    %cst = arith.constant dense<0.000000e+00> : vector<8x128xf32>
    %8 = tpu.matmul %6, %7, %cst {dimension_numbers = #tpu.dot_dimension_numbers<[1], [0], [0], [1], [0, 0, 1, 1], [], []>, precision = #tpu.contract_precision<fp32>} : vector<8x128xf32>, vector<128x128xf32>, vector<8x128xf32> -> vector<8x128xf32>
    %c0_4 = arith.constant 0 : index
    %c0_5 = arith.constant 0 : index
    %9 = vector.load %arg4[%c0_4, %c0_5] : memref<8x128xf32, #tpu.memory_space<vmem>>, vector<8x128xf32>
    %10 = arith.addf %8, %9 : vector<8x128xf32>
    %cst_6 = arith.constant dense<0.000000e+00> : vector<8xf32>
    %11 = vector.multi_reduction <add>, %10, %cst_6 [1] : vector<8x128xf32> to vector<8xf32>
    %12 = vector.shape_cast %11 : vector<8xf32> to vector<8x1xf32>
    %13 = arith.mulf %10, %10 : vector<8x128xf32>
    %cst_7 = arith.constant dense<0.000000e+00> : vector<8xf32>
    %14 = vector.multi_reduction <add>, %13, %cst_7 [1] : vector<8x128xf32> to vector<8xf32>
    %15 = vector.shape_cast %14 : vector<8xf32> to vector<8x1xf32>
    %cst_8 = arith.constant 7.812500e-03 : f32
    %16 = vector.broadcast %cst_8 : f32 to vector<8x1xf32>
    %17 = arith.mulf %12, %16 : vector<8x1xf32>
    %cst_9 = arith.constant 7.812500e-03 : f32
    %18 = vector.broadcast %cst_9 : f32 to vector<8x1xf32>
    %19 = arith.mulf %15, %18 : vector<8x1xf32>
    %20 = arith.mulf %17, %17 : vector<8x1xf32>
    %21 = arith.subf %19, %20 : vector<8x1xf32>
    %cst_10 = arith.constant 9.99999974E-6 : f32
    %22 = vector.broadcast %cst_10 : f32 to vector<8x1xf32>
    %23 = arith.addf %21, %22 : vector<8x1xf32>
    %24 = math.rsqrt %23 : vector<8x1xf32>
    %c0_11 = arith.constant 0 : index
    %c0_12 = arith.constant 0 : index
    %25 = vector.load %arg5[%c0_11, %c0_12] : memref<2x128xf32, #tpu.memory_space<vmem>>, vector<1x128xf32>
    %c1 = arith.constant 1 : index
    %c0_13 = arith.constant 0 : index
    %26 = vector.load %arg5[%c1, %c0_13] : memref<2x128xf32, #tpu.memory_space<vmem>>, vector<1x128xf32>
    %27 = vector.broadcast %17 : vector<8x1xf32> to vector<8x128xf32>
    %28 = arith.subf %10, %27 : vector<8x128xf32>
    %29 = vector.broadcast %24 : vector<8x1xf32> to vector<8x128xf32>
    %30 = arith.mulf %28, %29 : vector<8x128xf32>
    %31 = vector.broadcast %25 : vector<1x128xf32> to vector<8x128xf32>
    %32 = arith.mulf %30, %31 : vector<8x128xf32>
    %33 = vector.broadcast %26 : vector<1x128xf32> to vector<8x128xf32>
    %34 = arith.addf %32, %33 : vector<8x128xf32>
    %c0_14 = arith.constant 0 : index
    %c0_15 = arith.constant 0 : index
    %c0_16 = arith.constant 0 : index
    %35 = vector.load %arg6[%c0_14, %c0_15, %c0_16] : memref<1x8x128xf32, #tpu.memory_space<vmem>>, vector<1x8x128xf32>
    %36 = vector.shape_cast %35 : vector<1x8x128xf32> to vector<8x128xf32>
    %37 = vector.shape_cast %34 : vector<8x128xf32> to vector<1x8x128xf32>
    tpu.vector_store %arg6[%c0_14, %c0_15, %c0_16], %37 {strides = array<i32>} : memref<1x8x128xf32, #tpu.memory_space<vmem>>, vector<1x8x128xf32>,
    return
  }
  func.func @transform_0(%arg0: i32, %arg1: i32) -> (i32, i32, i32) {
    %c0_i32 = arith.constant 0 : i32
    %c0_i32_0 = arith.constant 0 : i32
    return %arg0, %arg1, %c0_i32 : i32, i32, i32
  }
  func.func @transform_1(%arg0: i32, %arg1: i32) -> (i32, i32) {
    %c0_i32 = arith.constant 0 : i32
    %c0_i32_0 = arith.constant 0 : i32
    %c0_i32_1 = arith.constant 0 : i32
    return %c0_i32, %c0_i32_0 : i32, i32
  }
  func.func @transform_2(%arg0: i32, %arg1: i32) -> (i32, i32) {
    %c0_i32 = arith.constant 0 : i32
    %c0_i32_0 = arith.constant 0 : i32
    return %arg1, %c0_i32 : i32, i32
  }
  func.func @transform_3(%arg0: i32, %arg1: i32) -> (i32, i32) {
    %c0_i32 = arith.constant 0 : i32
    %c0_i32_0 = arith.constant 0 : i32
    %c0_i32_1 = arith.constant 0 : i32
    return %c0_i32, %c0_i32_0 : i32, i32
  }
  func.func @transform_4(%arg0: i32, %arg1: i32) -> (i32, i32, i32) {
    %c0_i32 = arith.constant 0 : i32
    %c0_i32_0 = arith.constant 0 : i32
    return %arg0, %arg1, %c0_i32 : i32, i32, i32
  }
}

</mosaic_0001>

<bundles_post_ra>
// kernel: tpu_custom_call.1
= control target key start
LH: loop header
LB: loop body
LE: loop exit
PB: predicated region body
PF: predicated region fallthrough
CT: control target
= control target key end

     0   :  { %9 = vsyncpa [#allocation3], 0  ;;  %s1339_s0 = inlined_call_operand.vmem [shape: s32[2,8,1], index: 0, kind: input, shape index: {}]   ;;  %s1340_s1 = inlined_call_operand.hbm [shape: f32[128,128], index: 1, kind: input, shape index: {}]   ;;  %s1341_s2 = inlined_call_operand.vmem [shape: f32[8,128], index: 2, kind: input, shape index: {}]   ;;  %s1342_s3 = inlined_call_operand.vmem [shape: f32[2,128], index: 3, kind: input, shape index: {}]   ;;  %s1343_s4 = inlined_call_operand.hbm [shape: f32[2,8,128], index: 4, kind: output, shape index: {}]  }
   0x1   :  { %10 = vsyncpa [#allocation4], 0 }
   0x2   :  { %12 = vsyncpa [#allocation4 + $0x1], 0  ;;  %s1002_s15 = smov 0   ;;  %s1004_s16 = smov 0  }
   0x3   :  { %s1006_s17 = smov 0   ;;  %s1008_s18 = smov 0  }
   0x4   :  { %s1010_s19 = smov 0   ;;  %s1012_s20 = smov 0  }
   0x5 LB: > { %s763_s21 = sadd.s32 4294967295, %s969_s20   ;;  %s764_s22 = sadd.s32 4294967294, %s969_s20   ;;  %s969_s20 = sphi %s1012_s20, %s18_s20   ;;  %s965_s19 = sphi %s1010_s19, %s1350_s19   ;;  %s961_s18 = sphi %s1008_s18, %s1349_s18   ;;  %s957_s17 = sphi %s1006_s17, %s1348_s17   ;;  %s953_s16 = sphi %s1004_s16, %s1347_s16   ;;  %s949_s15 = sphi %s1002_s15, %s1346_s15  }
   0x6   : > { %s30_s23 = sadd.s32 1, %s965_s19  ;;  %s135_s24 = sadd.s32 1, %s957_s17 }
   0x7   : > { %p32_p0 = scmp.ge.s32.totalorder %s30_s23, 2  ;;  %p145_p1 = scmp.ne.s32.totalorder %s957_s17, %s953_s16 }
   0x8   : > { %p146_p2 = scmp.eq.s32.totalorder %s763_s21, 1  ;;  %p151_p3 = scmp.ne.s32.totalorder %s953_s16, %s949_s15 }
   0x9   : > { %s1352_s23 = smov (%p32_p0, %s30_s23), 0  ;;  %p152_p5 = scmp.eq.s32.totalorder %s764_s22, 1 }
   0xa   : > { %p1042_p4 = por %p146_p2, %p145_p1  ;;  %s130_s26 = ssub.s32 %s965_s19, %s1352_s23 }
   0xb   : > { %p765_p6 = scmp.ge.s32.totalorder %s969_s20, 1  ;;  %p133_p7 = scmp.eq.s32.totalorder %s130_s26, 0 }
   0xc   : > { %p1049_p8 = por %p152_p5, %p151_p3  ;;  %p159_p9 = scmp.lt.s32.totalorder %s969_s20, 3 }
   0xd   : > { %s1055_s28 = scalar_select %p133_p7, %s957_s17, %s135_s24  }
   0xe   : > { %p160_p10 = pnand %p765_p6, %p159_p9  ;;  %p795_p11 = scmp.eq.s32.totalorder %s763_s21, 0 }
   0xf   : > { %s170_s5 = sshll.u32 %s1340_s1, 4  ;;  %s971_s6 = smov [#allocation2]   ;;  %s171_s5 = int_to_ptr.hbm [resolvable:$true] %s170_s5 }
  0x10   : > { %p787_p12 = pneg %p160_p10  ;;  %s172_s7 = sshll.u32 %s971_s6, 4  ;;  %s173_s7 = int_to_ptr.vmem [resolvable:$true] %s172_s7 }
  0x11   : > { %s972_s8 = smov 128   ;;  %s973_s9 = smov 8  }
  0x12   : > { %p788_p13 = pnand %p795_p11, %p787_p12  ;;  %208 = sbr.rel (%p160_p10) target bundleno = 445 (0x1bd), region = 36 }
  0x14   : > { %790 = dma.hbm_to_vmem [thread:$0]  (!%p788_p13), %s171_s5, 2048, %s173_s7, [#allocation3], %s972_s8, %s972_s8, %s973_s9  }
  0x17   : > { %940 = dma.done.wait (%p795_p11), [#allocation3], 2048  }
  0x18   : > { %942 = vsyncadd (%p795_p11), [#allocation3], 4294965248  ;;  %p241_p0 = scmp.lt.s32.totalorder %s961_s18, 1  ;;  %v974_v0 = vmov 0   ;;  %v276_v2 = vld [vmem:[#allocation2 + $0x78] sm:$0xff]  ;;  %v275_v3 = vld [vmem:[#allocation2 + $0x70] sm:$0xff] }
  0x19   : > { %852 = vset.pattern.permute.xlu0 %v974_v0  ;;  %v1065_v4 = vand.u32 4294901760, %v276_v2  ;;  %v1067_v5 = vand.u32 4294901760, %v275_v3  ;;  %v274_v6 = vld [vmem:[#allocation2 + $0x68] sm:$0xff]  ;;  %v273_v7 = vld [vmem:[#allocation2 + $0x60] sm:$0xff]  ;;  %v272_v8 = vld [vmem:[#allocation2 + $0x58] sm:$0xff]  ;;  %s238_s24 = sand.u32 1, %s953_s16  }
  0x1a   : > { %s242_s10 = scalar_select %p241_p0, %s961_s18, 1  ;;  %v1069_v9 = vand.u32 4294901760, %v274_v6  ;;  %v1071_v10 = vand.u32 4294901760, %v273_v7  ;;  %v1073_v11 = vand.u32 4294901760, %v272_v8  ;;  %v271_v12 = vld [vmem:[#allocation2 + $0x50] sm:$0xff]  ;;  %v270_v13 = vld [vmem:[#allocation2 + $0x48] sm:$0xff] }
  0x1b   : > { %v269_v14 = vld [vmem:[#allocation2 + $0x40] sm:$0xff]  ;;  %v1076_v15 = vsub.f32 %v276_v2, %v1065_v4  ;;  %v1079_v16 = vsub.f32 %v275_v3, %v1067_v5  ;;  %279 = vmatpush.msra.mxu0 %v1065_v4  ;;  %v1082_v17 = vand.u32 4294901760, %v271_v12  ;;  %v1084_v18 = vand.u32 4294901760, %v270_v13  ;;  %475 = vmatpush.msra.mxu3 %v1065_v4  ;;  %v268_v35 = vld [vmem:[#allocation2 + $0x38] sm:$0xff]  ;;  %v267_v36 = vld [vmem:[#allocation2 + $0x30] sm:$0xff]  ;;  %s771_s26 = sshll.u32 %s238_s24, 3 }
  0x1c   : > { %s772_s11 = sshll.u32 %s242_s10, 3  ;;  %v1088_v19 = vsub.f32 %v274_v6, %v1069_v9  ;;  %v1091_v20 = vsub.f32 %v273_v7, %v1071_v10  ;;  %v1094_v21 = vsub.f32 %v272_v8, %v1073_v11  ;;  %v1096_v22 = vand.u32 4294901760, %v269_v14  ;;  %v266_v40 = vld [vmem:[#allocation2 + $0x28] sm:$0xff]  ;;  %v265_v42 = vld [vmem:[#allocation2 + $0x20] sm:$0xff]  ;;  %v264_v50 = vld [vmem:[#allocation2 + $0x18] sm:$0xff]  ;;  %s778_s29 = sshll.u32 %s961_s18, 3 }
  0x1d   : > { %s247_s14 = scalar_lea.vmem %s1339_s0, %s772_s11  ;;  %v321_v23 = vand.u32 4294901760, %v1076_v15  ;;  %v327_v24 = vand.u32 4294901760, %v1079_v16  ;;  %v1101_v25 = vsub.f32 %v271_v12, %v1082_v17  ;;  %281 = vmatpush.msra.mxu0 %v1067_v5  ;;  %422 = vmatpush.msra.mxu2 %v1076_v15  ;;  %v1108_v28 = vsub.f32 %v270_v13, %v1084_v18  ;;  %v263_v56 = vld [vmem:[#allocation2 + $0x10] sm:$0xff]  ;;  %v262_v62 = vld [vmem:[#allocation2 + $0x8] sm:$0xff]  ;;  %v261_v6 = vld [vmem:[#allocation2] sm:$0xff]  ;;  %s660_s8 = scalar_lea.hbm %s1343_s4, %s778_s29 }
  0x1e   : > { %v252_v1 = vld [vmem:[%s247_s14] sm:$0xff]  ;;  %v333_v26 = vand.u32 4294901760, %v1088_v19  ;;  %v339_v27 = vand.u32 4294901760, %v1091_v20  ;;  %477 = vmatpush.msra.mxu3 %v1067_v5  ;;  %v345_v31 = vand.u32 4294901760, %v1094_v21  ;;  %v1125_v34 = vsub.f32 %v269_v14, %v1096_v22  ;;  %s240_s18 = scalar_lea.vmem [#allocation5], %s771_s26  ;;  %s664_s12 = sshll.u32 %s660_s8, 4  ;;  %s665_s12 = int_to_ptr.hbm [resolvable:$true] %s664_s12 }
  0x1f   : > { %256 = vperm.xlu0 %852, %v252_v1   ;;  %v322_v29 = vsub.f32 %v1076_v15, %v321_v23  ;;  %v328_v30 = vsub.f32 %v1079_v16, %v327_v24  ;;  %283 = vmatpush.msra.mxu0 %v1069_v9  ;;  %v351_v33 = vand.u32 4294901760, %v1101_v25  ;;  %v357_v41 = vand.u32 4294901760, %v1108_v28  ;;  %s662_s11 = sshll.u32 %s240_s18, 4  ;;  %s649_s13 = scalar_lea.sflag [#allocation4], %s238_s24  ;;  %s663_s11 = int_to_ptr.vmem [resolvable:$true] %s662_s11 }
  0x20   : > { %425 = vmatpush.msra.mxu2 %v1079_v16  ;;  %v334_v32 = vsub.f32 %v1088_v19, %v333_v26  ;;  %479 = vmatpush.msra.mxu3 %v1069_v9  ;;  %v340_v39 = vsub.f32 %v1091_v20, %v339_v27  ;;  %v346_v44 = vsub.f32 %v1094_v21, %v345_v31  ;;  %v1138_v45 = vand.u32 4294901760, %v268_v35  ;;  %s901_s14 = sshra.s32 %s665_s12, 4  ;;  %s907_s30 = scalar_lea.hbm %s1343_s4, 16  ;;  %s902_s14 = int_to_ptr.hbm [resolvable:$true] %s901_s14 }
  0x21   : > { %v323_v37 = vand.u32 4294901760, %v322_v29  ;;  %v329_v38 = vand.u32 4294901760, %v328_v30  ;;  %285 = vmatpush.msra.mxu0 %v1071_v10  ;;  %v1141_v46 = vand.u32 4294901760, %v267_v36  ;;  %v352_v47 = vsub.f32 %v1101_v25, %v351_v33  ;;  %s903_s21 = scalar_lea.hbm %s902_s14, 8  ;;  %p908_p5 = scmp.lt.s32.totalorder %s902_s14, %s1343_s4 }
  0x22   : > { %428 = vmatpush.msra.mxu2 %v1088_v19  ;;  %481 = vmatpush.msra.mxu3 %v1071_v10  ;;  %v335_v43 = vand.u32 4294901760, %v334_v32  ;;  %v363_v48 = vand.u32 4294901760, %v1125_v34  ;;  %v1147_v49 = vand.u32 4294901760, %v266_v40  ;;  %v341_v51 = vand.u32 4294901760, %v340_v39  ;;  %p904_p1 = scmp.ne.s32.totalorder %s902_s14, %s903_s21  ;;  %p909_p6 = scmp.lt.s32.totalorder %s907_s30, %s903_s21 }
  0x23   : > { %324 = vmatpush.msra.mxu1 %v323_v37  ;;  %287 = vmatpush.msra.mxu0 %v1073_v11  ;;  %v1152_v52 = vsub.f32 %v268_v35, %v1138_v45  ;;  %v1155_v53 = vsub.f32 %v267_v36, %v1141_v46  ;;  %v1158_v54 = vand.u32 4294901760, %v265_v42  ;;  %v358_v55 = vsub.f32 %v1108_v28, %v357_v41 }
  0x24   : > { %431 = vmatpush.msra.mxu2 %v1091_v20  ;;  %483 = vmatpush.msra.mxu3 %v1073_v11  ;;  %v347_v57 = vand.u32 4294901760, %v346_v44  ;;  %v1167_v59 = vsub.f32 %v266_v40, %v1147_v49  ;;  %v1170_v60 = vand.u32 4294901760, %v264_v50  ;;  %v364_v61 = vsub.f32 %v1125_v34, %v363_v48  ;;  %v277_v20 = vld [vmem:[%s1341_s2] sm:$0xff]  ;;  %p905_p2 = pnand %p904_p1, %p1042_p4  ;;  %p910_p7 = por %p909_p6, %p908_p5 }
  0x25   : > { %330 = vmatpush.msra.mxu1 %v329_v38  ;;  %289 = vmatpush.msra.mxu0 %v1082_v17  ;;  %v369_v58 = vand.u32 4294901760, %v1152_v52  ;;  %v353_v63 = vand.u32 4294901760, %v352_v47  ;;  %v375_v0 = vand.u32 4294901760, %v1155_v53  ;;  %v1179_v1 = vsub.f32 %v265_v42, %v1158_v54 }
  0x26   : > { %434 = vmatpush.msra.mxu2 %v1094_v21  ;;  %485 = vmatpush.msra.mxu3 %v1082_v17  ;;  %v1182_v2 = vand.u32 4294901760, %v263_v56  ;;  %v359_v3 = vand.u32 4294901760, %v358_v55  ;;  %v381_v8 = vand.u32 4294901760, %v1167_v59  ;;  %v1191_v12 = vsub.f32 %v264_v50, %v1170_v60  ;;  %p906_p3 = pneg %p905_p2 }
  0x27   : > { %336 = vmatpush.msra.mxu1 %v335_v43  ;;  %291 = vmatpush.msra.mxu0 %v1084_v18  ;;  %v370_v7 = vsub.f32 %v1152_v52, %v369_v58  ;;  %v1194_v13 = vand.u32 4294901760, %v262_v62  ;;  %v365_v14 = vand.u32 4294901760, %v364_v61  ;;  %v376_v29 = vsub.f32 %v1155_v53, %v375_v0 }
  0x28   : > { %437 = vmatpush.msra.mxu2 %v1101_v25  ;;  %487 = vmatpush.msra.mxu3 %v1084_v18  ;;  %v387_v30 = vand.u32 4294901760, %v1179_v1  ;;  %v1203_v32 = vsub.f32 %v263_v56, %v1182_v2  ;;  %v1206_v35 = vand.u32 4294901760, %v261_v6  ;;  %v382_v37 = vsub.f32 %v1167_v59, %v381_v8  ;;  %p911_p9 = pnand %p910_p7, %p906_p3 }
  0x29   : > { %342 = vmatpush.msra.mxu1 %v341_v51  ;;  %293 = vmatpush.msra.mxu0 %v1096_v22  ;;  %v371_v36 = vand.u32 4294901760, %v370_v7  ;;  %v393_v38 = vand.u32 4294901760, %v1191_v12  ;;  %v1215_v39 = vsub.f32 %v262_v62, %v1194_v13  ;;  %v377_v40 = vand.u32 4294901760, %v376_v29 }
  0x2a   : > { %440 = vmatpush.msra.mxu2 %v1108_v28  ;;  %489 = vmatpush.msra.mxu3 %v1096_v22  ;;  %v388_v42 = vsub.f32 %v1179_v1, %v387_v30  ;;  %v399_v43 = vand.u32 4294901760, %v1203_v32  ;;  %v1225_v44 = vsub.f32 %v261_v6, %v1206_v35  ;;  %v383_v47 = vand.u32 4294901760, %v382_v37 }
  0x2b   : > { %348 = vmatpush.msra.mxu1 %v347_v57  ;;  %295 = vmatpush.msra.mxu0 %v1138_v45  ;;  %v394_v50 = vsub.f32 %v1191_v12, %v393_v38  ;;  %v405_v51 = vand.u32 4294901760, %v1215_v39 }
  0x2c   : > { %443 = vmatpush.msra.mxu2 %v1125_v34  ;;  %491 = vmatpush.msra.mxu3 %v1138_v45  ;;  %v389_v55 = vand.u32 4294901760, %v388_v42  ;;  %v400_v56 = vsub.f32 %v1203_v32, %v399_v43  ;;  %v411_v57 = vand.u32 4294901760, %v1225_v44 }
  0x2d   : > { %354 = vmatpush.msra.mxu1 %v353_v63  ;;  %297 = vmatpush.msra.mxu0 %v1141_v46  ;;  %v395_v61 = vand.u32 4294901760, %v394_v50  ;;  %v406_v62 = vsub.f32 %v1215_v39, %v405_v51 }
  0x2e   : > { %446 = vmatpush.msra.mxu2 %v1152_v52  ;;  %493 = vmatpush.msra.mxu3 %v1141_v46  ;;  %v401_v63 = vand.u32 4294901760, %v400_v56 }
  0x2f   : > { %360 = vmatpush.msra.mxu1 %v359_v3  ;;  %299 = vmatpush.msra.mxu0 %v1147_v49  ;;  %v412_v3 = vsub.f32 %v1225_v44, %v411_v57  ;;  %v407_v6 = vand.u32 4294901760, %v406_v62 }
  0x30   : > { %449 = vmatpush.msra.mxu2 %v1155_v53  ;;  %495 = vmatpush.msra.mxu3 %v1147_v49 }
  0x31   : > { %366 = vmatpush.msra.mxu1 %v365_v14  ;;  %301 = vmatpush.msra.mxu0 %v1158_v54  ;;  %v413_v7 = vand.u32 4294901760, %v412_v3 }
  0x32   : > { %452 = vmatpush.msra.mxu2 %v1167_v59  ;;  %497 = vmatpush.msra.mxu3 %v1158_v54 }
  0x33   : > { %372 = vmatpush.msra.mxu1 %v371_v36  ;;  %303 = vmatpush.msra.mxu0 %v1170_v60 }
  0x34   : > { %455 = vmatpush.msra.mxu2 %v1179_v1  ;;  %499 = vmatpush.msra.mxu3 %v1170_v60 }
  0x35   : > { %378 = vmatpush.msra.mxu1 %v377_v40  ;;  %305 = vmatpush.msra.mxu0 %v1182_v2 }
  0x36   : > { %458 = vmatpush.msra.mxu2 %v1191_v12  ;;  %501 = vmatpush.msra.mxu3 %v1182_v2 }
  0x37   : > { %384 = vmatpush.msra.mxu1 %v383_v47  ;;  %307 = vmatpush.msra.mxu0 %v1194_v13 }
  0x38   : > { %461 = vmatpush.msra.mxu2 %v1203_v32  ;;  %503 = vmatpush.msra.mxu3 %v1194_v13 }
  0x39   : > { %390 = vmatpush.msra.mxu1 %v389_v55  ;;  %309 = vmatpush.msra.mxu0 %v1206_v35 }
  0x3a   : > { %464 = vmatpush.msra.mxu2 %v1215_v39  ;;  %505 = vmatpush.msra.mxu3 %v1206_v35 }
  0x3b   : > { %516 = vmatpush.msrb.mxu0 %v321_v23  ;;  %396 = vmatpush.msra.mxu1 %v395_v61 }
  0x3c   : > { %467 = vmatpush.msra.mxu2 %v1225_v44 }
  0x3d   : > { %520 = vmatpush.msrb.mxu0 %v327_v24  ;;  %402 = vmatpush.msra.mxu1 %v401_v63 }
  0x3f   : > { %524 = vmatpush.msrb.mxu0 %v333_v26  ;;  %408 = vmatpush.msra.mxu1 %v407_v6 }
  0x41   : > { %528 = vmatpush.msrb.mxu0 %v339_v27  ;;  %414 = vmatpush.msra.mxu1 %v413_v7 }
  0x43   : > { %583 = vmatpush.msrb.mxu1 %v1065_v4  ;;  %532 = vmatpush.msrb.mxu0 %v345_v31  ;;  %v253_v4 = vlaneseq }
  0x45   : > { %585 = vmatpush.msrb.mxu1 %v1067_v5  ;;  %536 = vmatpush.msrb.mxu0 %v351_v33  ;;  %v254_v5 = vand.u32 127, %v253_v4 }
  0x47   : > { %587 = vmatpush.msrb.mxu1 %v1069_v9  ;;  %540 = vmatpush.msrb.mxu0 %v357_v41 }
  0x49   : > { %589 = vmatpush.msrb.mxu1 %v1071_v10  ;;  %544 = vmatpush.msrb.mxu0 %v363_v48  ;;  %v975_v10 = vmov 1.0  }
  0x4b   : > { %591 = vmatpush.msrb.mxu1 %v1073_v11  ;;  %548 = vmatpush.msrb.mxu0 %v369_v58  ;;  %v976_v11 = vmov 0.0  }
  0x4d   : > { %593 = vmatpush.msrb.mxu1 %v1082_v17  ;;  %552 = vmatpush.msrb.mxu0 %v375_v0 }
  0x4f   : > { %595 = vmatpush.msrb.mxu1 %v1084_v18  ;;  %556 = vmatpush.msrb.mxu0 %v381_v8 }
  0x51   : > { %597 = vmatpush.msrb.mxu1 %v1096_v22  ;;  %560 = vmatpush.msrb.mxu0 %v387_v30  ;;  %v854_v30 = vld [vmem:[%s1342_s3 + $0x1] ss:$0 sm:$0xff] }
  0x53   : > { %599 = vmatpush.msrb.mxu1 %v1138_v45  ;;  %564 = vmatpush.msrb.mxu0 %v393_v38 }
  0x55   : > { %601 = vmatpush.msrb.mxu1 %v1141_v46  ;;  %568 = vmatpush.msrb.mxu0 %v399_v43 }
  0x57   : > { %603 = vmatpush.msrb.mxu1 %v1147_v49  ;;  %572 = vmatpush.msrb.mxu0 %v405_v51 }
  0x59   : > { %605 = vmatpush.msrb.mxu1 %v1158_v54  ;;  %576 = vmatpush.msrb.mxu0 %v411_v57 }
  0x5b   : > { %607 = vmatpush.msrb.mxu1 %v1170_v60 }
  0x5d   : > { %609 = vmatpush.msrb.mxu1 %v1182_v2 }
  0x5f   : > { %611 = vmatpush.msrb.mxu1 %v1194_v13  ;;  %v853_v13 = vld [vmem:[%s1342_s3] ss:$0 sm:$0xff] }
  0x61   : > { %613 = vmatpush.msrb.mxu1 %v1206_v35 }
  0x91   : > { %v257_v9 = vpop.permute.xlu0 %256 }
  0x92   : > { %vm258_vm0 = vcmp.eq.s32.totalorder %v257_v9, %v254_v5 }
  0x93   : > { %774 = vmatmul.msk.f32.vlgmr.msra.gmra.mxu1 %vm258_vm0, %v975_v10  ;;  %v773_v15 = vsel %vm258_vm0, 1.0, %v976_v11 }
  0x94   : > { %v311_v16 = vsub.f32 %v773_v15, %v773_v15 }
  0x96   : > { %470 = vmatmul.f32.vlgmr.msra.gmra.mxu2 %v311_v16  ;;  %v312_v17 = vand.u32 4294901760, %v311_v16 }
  0x98   : > { %509 = vmatmul.f32.vlgmr.msra.gmra.mxu3 %v312_v17  ;;  %v313_v18 = vsub.f32 %v311_v16, %v312_v17 }
  0x9a   : > { %v314_v19 = vand.u32 4294901760, %v313_v18 }
  0x9b   : > { %776 = vmatmul.msk.f32.vlgmr.msrb.gmra.mxu1 %vm258_vm0, %v975_v10 }
  0x9c   : > { %315 = vmatmul.f32.vlgmr.msra.gmra.mxu0 %v314_v19 }
  0xa4   : > { %775 = vmatmul.msk.f32.vlgmr.msrb.gmra.mxu0 %vm258_vm0, %v975_v10 }
 0x110   : > { %v417_v21 = vpop.f32.mrf.mxu1 }
 0x118   : > { %v616_v34 = vpop.f32.mrf.mxu1 }
 0x119   : > { %v316_v22 = vpop.f32.mrf.mxu0  ;;  %v471_v25 = vpop.f32.mrf.mxu2 }
 0x11a   : > { %v317_v23 = vadd.f32 %v316_v22, %v277_v20 }
 0x11b   : > { %v510_v27 = vpop.f32.mrf.mxu3 }
 0x11c   : > { %v418_v24 = vadd.f32 %v417_v21, %v317_v23 }
 0x11e   : > { %v472_v26 = vadd.f32 %v471_v25, %v418_v24 }
 0x120   : > { %v511_v28 = vadd.f32 %v510_v27, %v472_v26 }
 0x121   : > { %v579_v31 = vpop.f32.mrf.mxu0 }
 0x122   : > { %v580_v33 = vadd.f32 %v579_v31, %v511_v28 }
 0x124   : > { %v617_v41 = vadd.f32 %v616_v34, %v580_v33 }
 0x126   : > { %619 = vadd.xlane.f32.xlu0 %v617_v41  ;;  %v621_v45 = vmul.f32 %v617_v41, %v617_v41 }
 0x128   : > { %622 = vadd.xlane.f32.xlu1 %v621_v45 }
 0x199   : > { %v620_v46 = vpop.xlane.xlu0 %619 }
 0x19a   : > { %v624_v48 = vmul.f32 0.0078125, %v620_v46 }
 0x19b   : > { %v623_v49 = vpop.xlane.xlu1 %622 }
 0x19c   : > { %v626_v52 = vmul.f32 %v624_v48, %v624_v48  ;;  %v625_v53 = vmul.f32 0.0078125, %v623_v49  ;;  %v641_v12 = vsub.f32 %v617_v41, %v624_v48 }
 0x19e   : > { %v627_v54 = vsub.f32 %v625_v53, %v626_v52 }
 0x1a0   : > { %v628_v58 = vadd.f32 1e-05, %v627_v54 }
 0x1a2   : > { %855 = vrsqrt.f32 %v628_v58  ;;  %vm635_vm2 = vweird.f32 %v628_v58 }
 0x1a8   : > { %v856_v59 = vpop.eup %855 }
 0x1a9   : > { %v630_v60 = vmul.f32 %v856_v59, %v628_v58  ;;  %vm636_vm1 = vweird.f32 %v856_v59 }
 0x1aa   : > { %vm637_vm3 = vmor %vm635_vm2, %vm636_vm1 }
 0x1ab   : > { %v631_v0 = vmul.f32 %v856_v59, %v630_v60 }
 0x1ad   : > { %v632_v1 = vmul.f32 0.5, %v631_v0 }
 0x1af   : > { %v633_v2 = vsub.f32 1.5, %v632_v1 }
 0x1b1   : > { %v634_v8 = vmul.f32 %v856_v59, %v633_v2 }
 0x1b3   : > { %v638_v14 = vsel %vm637_vm3, %v856_v59, %v634_v8 }
 0x1b4   : > { %v642_v29 = vmul.f32 %v641_v12, %v638_v14 }
 0x1b6   : > { %v644_v32 = vmul.f32 %v853_v13, %v642_v29 }
 0x1b8   : > { %v646_v35 = vadd.f32 %v854_v30, %v644_v32 }
 0x1ba   : > { %647 = vst [vmem:[%s240_s18] sm:$0xff] %v646_v35 }
 0x1bb   : > { %914 = shalt.err (!%p911_p9)
}
 0x1bc   : > { %785 = dma.vmem_to_hbm [thread:$0]  (%p1042_p4), %s663_s11, 128, %s665_s12, %s649_s13  }
 0x1bd PF: > { %p797_p10 = scmp.ge.s32.totalorder %s969_s20, 2  ;;  %s676_s24 = sand.u32 1, %s949_s15  }
 0x1be   : > { %s677_s6 = scalar_lea.sflag [#allocation4], %s676_s24 }
 0x1bf   : > { %p792_p11 = pnand %p797_p10, %p1049_p8 }
 0x1c1   : > { %p793_p12 = pneg %p792_p11 }
 0x1c3   : > { %944 = dma.done.wait (%p793_p12), %s677_s6, 128  }
 0x1c4   : > { %946 = vsyncadd (%p793_p12), %s677_s6, 4294967168  ;;  %s18_s20 = sadd.s32 1, %s969_s20   ;;  %s1346_s15 = smov %s953_s16 }
 0x1c5   : > { %p15_p13 = scmp.ge.s32.totalorder %s18_s20, 4   ;;  %s1347_s16 = smov %s957_s17 }
 0x1c6   : > { %s1348_s17 = smov %s1055_s28  ;;  %s1349_s18 = smov %s965_s19 }
 0x1c7   : > { %s1350_s19 = smov %s1352_s23  ;;  %17 = sbr.rel (!%p15_p13) target bundleno = 5 (0x5), region = 79 }
 0x1cc   :  { %683 = vsyncpa [#allocation3], 1 }
 0x1cd   :  { %685 = vsyncpa [#allocation3 + $0x1], 1 }
 0x1ce   :  { %686 = vsyncpa [#allocation4], 1 }
 0x1cf   :  { %688 = vsyncpa [#allocation4 + $0x1], 1 }

</bundles_post_ra>
